<compile_context>
chip_gen: v6e
topology: v6e:2x2x1
jax: 0.10.0
libtpu: 0.0.40
codegen_flags: <defaults>
</compile_context>

<pallas_src>
import math

import jax
import jax.numpy as jnp
from jax import lax
from jax.experimental import pallas as pl
from jax.experimental.pallas import tpu as pltpu


def _round_up(a: int, m: int) -> int:
    return (a + m - 1) // m * m


def teacher_f_kernel(x_ref, w1_ref, b1_ref, w2_ref, b2_ref, h_ref, fea_ref):
    # NaN imputation.
    x = x_ref[...]
    x = jnp.where(jnp.isnan(x), jnp.zeros_like(x), x)

    # Contract last dim of activations with last dim of [out, in] weights (x @ W^T).
    dn = (((1,), (1,)), ((), ()))

    # fm1: Linear(in_dim -> hid_dim), bias=True.  Dropout x2 is identity in eval mode.
    fea = lax.dot_general(x, w1_ref[...], dn,
                          preferred_element_type=jnp.float32) + b1_ref[...]
    fea_ref[...] = fea.astype(fea_ref.dtype)

    # fm2: Linear(hid_dim -> n_classes), bias=True.
    h = lax.dot_general(fea, w2_ref[...], dn,
                        preferred_element_type=jnp.float32) + b2_ref[...]
    h_ref[...] = h.astype(h_ref.dtype)


def teacher_f_forward(x, w1, b1, w2, b2, *, block_rows=512):
    """x: [N, in_dim]; w1: [hid_dim, in_dim]; b1: [hid_dim];
    w2: [n_classes, hid_dim]; b2: [n_classes].
    Returns (h: [N, n_classes], fea_rep: [N, hid_dim])."""
    n, in_dim = x.shape
    hid_dim = w1.shape[0]
    n_classes = w2.shape[0]

    # Row tile: multiple of 8 sublanes, capped at block_rows; pad rows so grid divides.
    tm = _round_up(min(block_rows, _round_up(n, 8)), 8)
    n_pad = _round_up(n, tm)
    x_p = x if n_pad == n else jnp.pad(x, ((0, n_pad - n), (0, 0)))

    b1_2d = jnp.asarray(b1).reshape(1, hid_dim)
    b2_2d = jnp.asarray(b2).reshape(1, n_classes)

    grid = (pl.cdiv(n_pad, tm),)

    h, fea = pl.pallas_call(
        teacher_f_kernel,
        grid=grid,
        in_specs=[
            pl.BlockSpec((tm, in_dim), lambda i: (i, 0)),          # x tile (pipelined)
            pl.BlockSpec((hid_dim, in_dim), lambda i: (0, 0)),     # W1 resident
            pl.BlockSpec((1, hid_dim), lambda i: (0, 0)),          # b1 resident
            pl.BlockSpec((n_classes, hid_dim), lambda i: (0, 0)),  # W2 resident
            pl.BlockSpec((1, n_classes), lambda i: (0, 0)),        # b2 resident
        ],
        out_specs=(
            pl.BlockSpec((tm, n_classes), lambda i: (i, 0)),
            pl.BlockSpec((tm, hid_dim), lambda i: (i, 0)),
        ),
        out_shape=(
            jax.ShapeDtypeStruct((n_pad, n_classes), jnp.float32),
            jax.ShapeDtypeStruct((n_pad, hid_dim), jnp.float32),
        ),
        compiler_params=pltpu.CompilerParams(
            dimension_semantics=("parallel",),
            vmem_limit_bytes=32 * 1024 * 1024,
        ),
    )(x_p, w1, b1_2d, w2, b2_2d)

    if n_pad != n:
        h = h[:n]
        fea = fea[:n]
    return h, fea


# ------------------------- deterministic parameter init -------------------------
def xavier_uniform(key, shape, gain=1.0):
    fan_out, fan_in = shape
    a = gain * math.sqrt(6.0 / (fan_in + fan_out))
    return jax.random.uniform(key, shape, minval=-a, maxval=a, dtype=jnp.float32)


if __name__ == "__main__":
    # Small shapes consistent with the module (num_layers > 1): enough rows to
    # exercise a multi-step row grid with TM=128.
    num_nodes, in_dim, hid_dim, n_classes = 512, 16, 32, 8

    key = jax.random.PRNGKey(0)
    kx, k1, k2 = jax.random.split(key, 3)

    x = jax.random.normal(kx, (num_nodes, in_dim), dtype=jnp.float32)
    # Inject some NaNs to exercise the imputation path.
    x = x.at[0, 0].set(jnp.nan).at[3, 5].set(jnp.nan).at[257, 7].set(jnp.nan)

    # fm1 / fm2 weights: xavier_uniform, biases zero (matches weights_init()).
    w1 = xavier_uniform(k1, (hid_dim, in_dim))
    b1 = jnp.zeros((hid_dim,), dtype=jnp.float32)
    w2 = xavier_uniform(k2, (n_classes, hid_dim))
    b2 = jnp.zeros((n_classes,), dtype=jnp.float32)

    forward = jax.jit(
        lambda x, w1, b1, w2, b2: teacher_f_forward(x, w1, b1, w2, b2, block_rows=128)
    )
    h, fea_rep = forward(x, w1, b1, w2, b2)
    jax.block_until_ready((h, fea_rep))

    # Reference check in plain JAX.
    x_clean = jnp.where(jnp.isnan(x), 0.0, x)
    fea_ref = jnp.dot(x_clean, w1.T, preferred_element_type=jnp.float32) + b1
    h_ref = jnp.dot(fea_ref, w2.T, preferred_element_type=jnp.float32) + b2
    assert h.shape == (num_nodes, n_classes)
    assert fea_rep.shape == (num_nodes, hid_dim)
    assert not jnp.any(jnp.isnan(fea_rep)) and not jnp.any(jnp.isnan(h))
    assert jnp.allclose(fea_rep, fea_ref, atol=1e-4, rtol=1e-4), "fea_rep mismatch"
    assert jnp.allclose(h, h_ref, atol=1e-4, rtol=1e-4), "h mismatch"

    print("KERNEL_OK")
</pallas_src>

<mosaic_0001>
module attributes {stable_mosaic.version = 11 : i64} {
  func.func @teacher_f_kernel(%arg0: i32, %arg1: memref<128x16xf32, #tpu.memory_space<vmem>>, %arg2: memref<32x16xf32, #tpu.memory_space<vmem>>, %arg3: memref<1x32xf32, #tpu.memory_space<vmem>>, %arg4: memref<8x32xf32, #tpu.memory_space<vmem>>, %arg5: memref<1x8xf32, #tpu.memory_space<vmem>>, %arg6: memref<128x8xf32, #tpu.memory_space<vmem>>, %arg7: memref<128x32xf32, #tpu.memory_space<vmem>>) attributes {dimension_semantics = [#tpu.dimension_semantics<parallel>], iteration_bounds = array<i64: 4>, scalar_prefetch = 0 : i64, scratch_operands = 0 : i64, tpu.core_type = #tpu.core_type<tc>, window_params = [{transform_indices = @transform_0, window_bounds = array<i64: 128, 16>}, {pipeline_mode = #tpu.pipeline_mode<synchronous>, transform_indices = @transform_1, window_bounds = array<i64: 32, 16>}, {pipeline_mode = #tpu.pipeline_mode<synchronous>, transform_indices = @transform_2, window_bounds = array<i64: 1, 32>}, {pipeline_mode = #tpu.pipeline_mode<synchronous>, transform_indices = @transform_3, window_bounds = array<i64: 8, 32>}, {pipeline_mode = #tpu.pipeline_mode<synchronous>, transform_indices = @transform_4, window_bounds = array<i64: 1, 8>}, {transform_indices = @transform_5, window_bounds = array<i64: 128, 8>}, {transform_indices = @transform_6, window_bounds = array<i64: 128, 32>}]} {
    %c0 = arith.constant 0 : index
    %c0_0 = arith.constant 0 : index
    %0 = vector.load %arg1[%c0, %c0_0] : memref<128x16xf32, #tpu.memory_space<vmem>>, vector<128x16xf32>
    %1 = arith.cmpf one, %0, %0 : vector<128x16xf32>
    %cst = arith.constant 0.000000e+00 : f32
    %2 = vector.broadcast %cst : f32 to vector<128x16xf32>
    %3 = arith.select %1, %2, %0 : vector<128x16xi1>, vector<128x16xf32>
    %c0_1 = arith.constant 0 : index
    %c0_2 = arith.constant 0 : index
    %4 = vector.load %arg2[%c0_1, %c0_2] : memref<32x16xf32, #tpu.memory_space<vmem>>, vector<32x16xf32>
    %cst_3 = arith.constant dense<0.000000e+00> : vector<128x32xf32>
    %5 = tpu.matmul %3, %4, %cst_3 {dimension_numbers = #tpu.dot_dimension_numbers<[1], [1], [0], [0], [0, 0, 1, 0], [], []>} : vector<128x16xf32>, vector<32x16xf32>, vector<128x32xf32> -> vector<128x32xf32>
    %c0_4 = arith.constant 0 : index
    %c0_5 = arith.constant 0 : index
    %6 = vector.load %arg3[%c0_4, %c0_5] : memref<1x32xf32, #tpu.memory_space<vmem>>, vector<1x32xf32>
    %7 = vector.broadcast %6 : vector<1x32xf32> to vector<128x32xf32>
    %8 = arith.addf %5, %7 : vector<128x32xf32>
    %c0_6 = arith.constant 0 : index
    %c0_7 = arith.constant 0 : index
    %9 = vector.load %arg7[%c0_6, %c0_7] : memref<128x32xf32, #tpu.memory_space<vmem>>, vector<128x32xf32>
    tpu.vector_store %arg7[%c0_6, %c0_7], %8 {strides = array<i32>} : memref<128x32xf32, #tpu.memory_space<vmem>>, vector<128x32xf32>,
    %c0_8 = arith.constant 0 : index
    %c0_9 = arith.constant 0 : index
    %10 = vector.load %arg4[%c0_8, %c0_9] : memref<8x32xf32, #tpu.memory_space<vmem>>, vector<8x32xf32>
    %cst_10 = arith.constant dense<0.000000e+00> : vector<128x8xf32>
    %11 = tpu.matmul %8, %10, %cst_10 {dimension_numbers = #tpu.dot_dimension_numbers<[1], [1], [0], [0], [0, 0, 1, 0], [], []>} : vector<128x32xf32>, vector<8x32xf32>, vector<128x8xf32> -> vector<128x8xf32>
    %c0_11 = arith.constant 0 : index
    %c0_12 = arith.constant 0 : index
    %12 = vector.load %arg5[%c0_11, %c0_12] : memref<1x8xf32, #tpu.memory_space<vmem>>, vector<1x8xf32>
    %13 = vector.broadcast %12 : vector<1x8xf32> to vector<128x8xf32>
    %14 = arith.addf %11, %13 : vector<128x8xf32>
    %c0_13 = arith.constant 0 : index
    %c0_14 = arith.constant 0 : index
    %15 = vector.load %arg6[%c0_13, %c0_14] : memref<128x8xf32, #tpu.memory_space<vmem>>, vector<128x8xf32>
    tpu.vector_store %arg6[%c0_13, %c0_14], %14 {strides = array<i32>} : memref<128x8xf32, #tpu.memory_space<vmem>>, vector<128x8xf32>,
    return
  }
  func.func @transform_0(%arg0: i32) -> (i32, i32) {
    %c0_i32 = arith.constant 0 : i32
    %c0_i32_0 = arith.constant 0 : i32
    return %arg0, %c0_i32 : i32, i32
  }
  func.func @transform_1(%arg0: i32) -> (i32, i32) {
    %c0_i32 = arith.constant 0 : i32
    %c0_i32_0 = arith.constant 0 : i32
    %c0_i32_1 = arith.constant 0 : i32
    return %c0_i32, %c0_i32_0 : i32, i32
  }
  func.func @transform_2(%arg0: i32) -> (i32, i32) {
    %c0_i32 = arith.constant 0 : i32
    %c0_i32_0 = arith.constant 0 : i32
    %c0_i32_1 = arith.constant 0 : i32
    return %c0_i32, %c0_i32_0 : i32, i32
  }
  func.func @transform_3(%arg0: i32) -> (i32, i32) {
    %c0_i32 = arith.constant 0 : i32
    %c0_i32_0 = arith.constant 0 : i32
    %c0_i32_1 = arith.constant 0 : i32
    return %c0_i32, %c0_i32_0 : i32, i32
  }
  func.func @transform_4(%arg0: i32) -> (i32, i32) {
    %c0_i32 = arith.constant 0 : i32
    %c0_i32_0 = arith.constant 0 : i32
    %c0_i32_1 = arith.constant 0 : i32
    return %c0_i32, %c0_i32_0 : i32, i32
  }
  func.func @transform_5(%arg0: i32) -> (i32, i32) {
    %c0_i32 = arith.constant 0 : i32
    %c0_i32_0 = arith.constant 0 : i32
    return %arg0, %c0_i32 : i32, i32
  }
  func.func @transform_6(%arg0: i32) -> (i32, i32) {
    %c0_i32 = arith.constant 0 : i32
    %c0_i32_0 = arith.constant 0 : i32
    return %arg0, %c0_i32 : i32, i32
  }
}

</mosaic_0001>

<bundles_post_ra>
// kernel: _lambda_.1
= control target key start
LH: loop header
LB: loop body
LE: loop exit
PB: predicated region body
PF: predicated region fallthrough
CT: control target
= control target key end

     0   :  { %s1060_s21 = smov 0   ;;  %s1234_s0 = inlined_call_operand.vmem [shape: f32[512,16], index: 0, kind: input, shape index: {}]   ;;  %s1235_s1 = inlined_call_operand.vmem [shape: f32[32,16], index: 1, kind: input, shape index: {}]   ;;  %s1236_s2 = inlined_call_operand.vmem [shape: f32[1,32], index: 2, kind: input, shape index: {}]   ;;  %s1237_s3 = inlined_call_operand.vmem [shape: f32[8,32], index: 3, kind: input, shape index: {}]   ;;  %s1238_s4 = inlined_call_operand.vmem [shape: f32[1,8], index: 4, kind: input, shape index: {}]   ;;  %s1239_s5 = inlined_call_operand.vmem [shape: f32[512,8], index: 5, kind: output, shape index: {0}]   ;;  %s1240_s6 = inlined_call_operand.vmem [shape: f32[512,32], index: 6, kind: output, shape index: {1}]  }
   0x1 LB: > { %s862_s22 = sadd.s32 4294967295, %s1023_s21   ;;  %p866_p0 = scmp.ge.s32.totalorder %s1023_s21, 1  ;;  %s1023_s21 = sphi %s1060_s21, %s17_s21  }
   0x2   : > { %p216_p1 = scmp.lt.s32.totalorder %s1023_s21, 5 }
   0x4   : > { %p217_p2 = pnand %p866_p0, %p216_p1 }
   0x5   : > { %s867_s27 = sshll.u32 (!%p217_p2), %s862_s22, 4 }
   0x6   : > { %220 = sbr.rel (%p217_p2) target bundleno = 452 (0x1c4), region = 40  ;;  %p252_p3 = scmp.lt.s32.totalorder (!%p217_p2), %s867_s27, 63 }
   0xb   : > { %v320_v0 = vld [vmem:[%s1235_s1 + $0x18] sm:$0xff]  ;;  %vm328_vm0 = vcmask 130048   ;;  %v319_v1 = vld [vmem:[%s1235_s1 + $0x10] sm:$0xff]  ;;  %s1242_s27 = smov (!%p252_p3, %s867_s27), 63  ;;  %v318_v2 = vld [vmem:[%s1235_s1 + $0x8] sm:$0xff] }
   0xc   : > { %951 = vmatprep.subr.msk.mxu0 %vm328_vm0, %v320_v0  ;;  %s1080_s30 = sshll.u32 %s1242_s27, 3  ;;  %v317_v4 = vld [vmem:[%s1235_s1] sm:$0xff] }
   0xd   : > { %952 = vmatpush3.xpose.msk.msra.mxu0 %vm328_vm0, %v320_v0  ;;  %s1087_s9 = scalar_lea.vmem %s1234_s0, %s1080_s30  ;;  %v551_v36 = vld [vmem:[%s1237_s3] sm:$0xff]  ;;  %s1140_s18 = scalar_lea.vmem %s1240_s6, %s1080_s30 }
   0xe   : > { %953 = vmatprep.subr.msk.mxu0 %vm328_vm0, %v319_v1  ;;  %v269_v3 = vld [vmem:[%s1087_s9] sm:$0xff]  ;;  %v270_v5 = vld [vmem:[%s1087_s9 + $0x8] sm:$0xff]  ;;  %v271_v7 = vld [vmem:[%s1087_s9 + $0x10] sm:$0xff]  ;;  %s1197_s24 = scalar_lea.vmem %s1239_s5, %s1080_s30 }
   0xf   : > { %vm285_vm1 = vcmp.ne.f32.partialorder %v269_v3, %v269_v3  ;;  %vm286_vm2 = vcmp.ne.f32.partialorder %v270_v5, %v270_v5  ;;  %vm287_vm3 = vcmp.ne.f32.partialorder %v271_v7, %v271_v7  ;;  %v272_v8 = vld [vmem:[%s1087_s9 + $0x18] sm:$0xff]  ;;  %v273_v9 = vld [vmem:[%s1087_s9 + $0x20] sm:$0xff]  ;;  %v274_v12 = vld [vmem:[%s1087_s9 + $0x28] sm:$0xff] }
  0x10   : > { %v301_v6 = vsel %vm285_vm1, 0.0, %v269_v3  ;;  %v302_v10 = vsel %vm286_vm2, 0.0, %v270_v5  ;;  %v303_v11 = vsel %vm287_vm3, 0.0, %v271_v7  ;;  %vm288_vm4 = vcmp.ne.f32.partialorder %v272_v8, %v272_v8  ;;  %v275_v13 = vld [vmem:[%s1087_s9 + $0x30] sm:$0xff]  ;;  %v276_v16 = vld [vmem:[%s1087_s9 + $0x38] sm:$0xff]  ;;  %v277_v17 = vld [vmem:[%s1087_s9 + $0x40] sm:$0xff] }
  0x11   : > { %954 = vmatpush3.xpose.msk.msra.mxu0 %vm328_vm0, %v319_v1  ;;  %959 = vmatprep.mubr.msk.f32.mxu0 %vm328_vm0, %v301_v6  ;;  %vm289_vm5 = vcmp.ne.f32.partialorder %v273_v9, %v273_v9  ;;  %v304_v14 = vsel %vm288_vm4, 0.0, %v272_v8  ;;  %vm290_vm6 = vcmp.ne.f32.partialorder %v274_v12, %v274_v12  ;;  %vm291_vm7 = vcmp.ne.f32.partialorder %v275_v13, %v275_v13  ;;  %v278_v20 = vld [vmem:[%s1087_s9 + $0x48] sm:$0xff]  ;;  %v279_v21 = vld [vmem:[%s1087_s9 + $0x50] sm:$0xff]  ;;  %v280_v24 = vld [vmem:[%s1087_s9 + $0x58] sm:$0xff] }
  0x12   : > { %955 = vmatprep.subr.msk.mxu0 %vm328_vm0, %v318_v2  ;;  %v305_v15 = vsel %vm289_vm5, 0.0, %v273_v9  ;;  %v306_v18 = vsel %vm290_vm6, 0.0, %v274_v12  ;;  %v307_v19 = vsel %vm291_vm7, 0.0, %v275_v13  ;;  %vm292_vm8 = vcmp.ne.f32.partialorder %v276_v16, %v276_v16  ;;  %v281_v25 = vld [vmem:[%s1087_s9 + $0x60] sm:$0xff]  ;;  %v282_v28 = vld [vmem:[%s1087_s9 + $0x68] sm:$0xff]  ;;  %v283_v29 = vld [vmem:[%s1087_s9 + $0x70] sm:$0xff] }
  0x13   : > { %vm293_vm9 = vcmp.ne.f32.partialorder %v277_v17, %v277_v17  ;;  %v308_v22 = vsel %vm292_vm8, 0.0, %v276_v16  ;;  %vm294_vm10 = vcmp.ne.f32.partialorder %v278_v20, %v278_v20  ;;  %vm295_vm11 = vcmp.ne.f32.partialorder %v279_v21, %v279_v21  ;;  %v284_v32 = vld [vmem:[%s1087_s9 + $0x78] sm:$0xff]  ;;  %v873_v37 = vld [vmem:[%s1236_s2] ss:$0 sm:$0xff] }
  0x14   : > { %v309_v23 = vsel %vm293_vm9, 0.0, %v277_v17  ;;  %v310_v26 = vsel %vm294_vm10, 0.0, %v278_v20  ;;  %v311_v27 = vsel %vm295_vm11, 0.0, %v279_v21  ;;  %vm296_vm12 = vcmp.ne.f32.partialorder %v280_v24, %v280_v24  ;;  %v894_v6 = vld [vmem:[%s1238_s4] ss:$0 sm:$0xff] }
  0x15   : > { %956 = vmatpush3.xpose.msk.msra.mxu0 %vm328_vm0, %v318_v2  ;;  %vm297_vm13 = vcmp.ne.f32.partialorder %v281_v25, %v281_v25  ;;  %v312_v30 = vsel %vm296_vm12, 0.0, %v280_v24  ;;  %vm298_vm14 = vcmp.ne.f32.partialorder %v282_v28, %v282_v28  ;;  %vm299_vm15 = vcmp.ne.f32.partialorder %v283_v29, %v283_v29 }
  0x16   : > { %957 = vmatprep.subr.msk.mxu0 %vm328_vm0, %v317_v4  ;;  %v313_v31 = vsel %vm297_vm13, 0.0, %v281_v25  ;;  %v314_v33 = vsel %vm298_vm14, 0.0, %v282_v28  ;;  %v315_v34 = vsel %vm299_vm15, 0.0, %v283_v29  ;;  %vm300_vm1 = vcmp.ne.f32.partialorder %v284_v32, %v284_v32 }
  0x17   : > { %v316_v35 = vsel %vm300_vm1, 0.0, %v284_v32  ;;  %vm534_vm2 = vcmask 261120  }
  0x18   : > { %983 = vmatprep.subr.msk.mxu1 %vm534_vm2, %v551_v36 }
  0x19   : > { %958 = vmatpush3.xpose.msk.msra.mxu0 %vm328_vm0, %v317_v4  ;;  %984 = vmatpush3.xpose.msk.msra.mxu1 %vm534_vm2, %v551_v36 }
  0x1c   : > { %960 = vmatmul.mubr.msk.f32.vlgmr.msra.gmra.mxu0 %vm328_vm0, %v302_v10 }
  0x1d   : > { %962 = vmatprep.mubr.msk.f32.mxu0 %vm328_vm0, %v303_v11 }
  0x20   : > { %963 = vmatmul.mubr.msk.f32.gmra.mxu0 %vm328_vm0, %v304_v14 }
  0x21   : > { %965 = vmatprep.mubr.msk.f32.mxu0 %vm328_vm0, %v305_v15 }
  0x24   : > { %966 = vmatmul.mubr.msk.f32.gmra.mxu0 %vm328_vm0, %v306_v18 }
  0x25   : > { %968 = vmatprep.mubr.msk.f32.mxu0 %vm328_vm0, %v307_v19 }
  0x28   : > { %969 = vmatmul.mubr.msk.f32.gmra.mxu0 %vm328_vm0, %v308_v22 }
  0x29   : > { %971 = vmatprep.mubr.msk.f32.mxu0 %vm328_vm0, %v309_v23 }
  0x2c   : > { %972 = vmatmul.mubr.msk.f32.gmra.mxu0 %vm328_vm0, %v310_v26 }
  0x2d   : > { %974 = vmatprep.mubr.msk.f32.mxu0 %vm328_vm0, %v311_v27 }
  0x30   : > { %975 = vmatmul.mubr.msk.f32.gmra.mxu0 %vm328_vm0, %v312_v30 }
  0x31   : > { %977 = vmatprep.mubr.msk.f32.mxu0 %vm328_vm0, %v313_v31 }
  0x34   : > { %978 = vmatmul.mubr.msk.f32.gmra.mxu0 %vm328_vm0, %v314_v33 }
  0x35   : > { %980 = vmatprep.mubr.msk.f32.mxu0 %vm328_vm0, %v315_v34 }
  0x38   : > { %981 = vmatmul.mubr.msk.f32.gmra.mxu0 %vm328_vm0, %v316_v35  ;;  %vm755_vm0 = vcmask 64512  }
  0xdc   : > { %v961_v38 = vpop.f32.mrf.mxu0 }
  0xdd   : > { %v461_v39 = vadd.f32 %v961_v38, %v873_v37 }
  0xde   : > { %v455_v40 = vpop.f32.mrf.mxu0 }
  0xdf   : > { %536 = vst.msk [vmem:[%s1140_s18 + $0x8] sm:$0xff] %vm534_vm2, %v461_v39  ;;  %v456_v41 = vadd.f32 %v873_v37, %v455_v40 }
  0xe0   : > { %v964_v42 = vpop.f32.mrf.mxu0 }
  0xe1   : > { %535 = vst.msk [vmem:[%s1140_s18] sm:$0xff] %vm534_vm2, %v456_v41  ;;  %v471_v43 = vadd.f32 %v964_v42, %v873_v37  ;;  %985 = vmatprep.mubr.msk.f32.mxu1 %vm534_vm2, %v456_v41 }
  0xe2   : > { %v465_v44 = vpop.f32.mrf.mxu0  ;;  %986 = vmatmul.mubr.msk.f32.vlgmr.msra.gmra.mxu1 %vm534_vm2, %v461_v39 }
  0xe3   : > { %538 = vst.msk [vmem:[%s1140_s18 + $0x18] sm:$0xff] %vm534_vm2, %v471_v43  ;;  %v466_v45 = vadd.f32 %v873_v37, %v465_v44 }
  0xe4   : > { %v967_v46 = vpop.f32.mrf.mxu0 }
  0xe5   : > { %537 = vst.msk [vmem:[%s1140_s18 + $0x10] sm:$0xff] %vm534_vm2, %v466_v45  ;;  %v481_v47 = vadd.f32 %v967_v46, %v873_v37  ;;  %988 = vmatprep.mubr.msk.f32.mxu1 %vm534_vm2, %v466_v45 }
  0xe6   : > { %v475_v48 = vpop.f32.mrf.mxu0  ;;  %989 = vmatmul.mubr.msk.f32.gmra.mxu1 %vm534_vm2, %v471_v43 }
  0xe7   : > { %540 = vst.msk [vmem:[%s1140_s18 + $0x28] sm:$0xff] %vm534_vm2, %v481_v47  ;;  %v476_v49 = vadd.f32 %v873_v37, %v475_v48 }
  0xe8   : > { %v970_v50 = vpop.f32.mrf.mxu0 }
  0xe9   : > { %539 = vst.msk [vmem:[%s1140_s18 + $0x20] sm:$0xff] %vm534_vm2, %v476_v49  ;;  %v491_v51 = vadd.f32 %v970_v50, %v873_v37  ;;  %991 = vmatprep.mubr.msk.f32.mxu1 %vm534_vm2, %v476_v49 }
  0xea   : > { %v485_v52 = vpop.f32.mrf.mxu0  ;;  %992 = vmatmul.mubr.msk.f32.gmra.mxu1 %vm534_vm2, %v481_v47 }
  0xeb   : > { %542 = vst.msk [vmem:[%s1140_s18 + $0x38] sm:$0xff] %vm534_vm2, %v491_v51  ;;  %v486_v53 = vadd.f32 %v873_v37, %v485_v52 }
  0xec   : > { %v973_v54 = vpop.f32.mrf.mxu0 }
  0xed   : > { %541 = vst.msk [vmem:[%s1140_s18 + $0x30] sm:$0xff] %vm534_vm2, %v486_v53  ;;  %v501_v55 = vadd.f32 %v973_v54, %v873_v37  ;;  %994 = vmatprep.mubr.msk.f32.mxu1 %vm534_vm2, %v486_v53 }
  0xee   : > { %v495_v56 = vpop.f32.mrf.mxu0  ;;  %995 = vmatmul.mubr.msk.f32.gmra.mxu1 %vm534_vm2, %v491_v51 }
  0xef   : > { %544 = vst.msk [vmem:[%s1140_s18 + $0x48] sm:$0xff] %vm534_vm2, %v501_v55  ;;  %v496_v57 = vadd.f32 %v873_v37, %v495_v56 }
  0xf0   : > { %v976_v58 = vpop.f32.mrf.mxu0 }
  0xf1   : > { %543 = vst.msk [vmem:[%s1140_s18 + $0x40] sm:$0xff] %vm534_vm2, %v496_v57  ;;  %v511_v59 = vadd.f32 %v976_v58, %v873_v37  ;;  %997 = vmatprep.mubr.msk.f32.mxu1 %vm534_vm2, %v496_v57 }
  0xf2   : > { %v505_v60 = vpop.f32.mrf.mxu0  ;;  %998 = vmatmul.mubr.msk.f32.gmra.mxu1 %vm534_vm2, %v501_v55 }
  0xf3   : > { %546 = vst.msk [vmem:[%s1140_s18 + $0x58] sm:$0xff] %vm534_vm2, %v511_v59  ;;  %v506_v61 = vadd.f32 %v873_v37, %v505_v60 }
  0xf4   : > { %v979_v62 = vpop.f32.mrf.mxu0 }
  0xf5   : > { %545 = vst.msk [vmem:[%s1140_s18 + $0x50] sm:$0xff] %vm534_vm2, %v506_v61  ;;  %v521_v63 = vadd.f32 %v979_v62, %v873_v37  ;;  %1000 = vmatprep.mubr.msk.f32.mxu1 %vm534_vm2, %v506_v61 }
  0xf6   : > { %v515_v0 = vpop.f32.mrf.mxu0  ;;  %1001 = vmatmul.mubr.msk.f32.gmra.mxu1 %vm534_vm2, %v511_v59 }
  0xf7   : > { %548 = vst.msk [vmem:[%s1140_s18 + $0x68] sm:$0xff] %vm534_vm2, %v521_v63  ;;  %v516_v1 = vadd.f32 %v873_v37, %v515_v0 }
  0xf8   : > { %v982_v2 = vpop.f32.mrf.mxu0 }
  0xf9   : > { %547 = vst.msk [vmem:[%s1140_s18 + $0x60] sm:$0xff] %vm534_vm2, %v516_v1  ;;  %v531_v3 = vadd.f32 %v982_v2, %v873_v37  ;;  %1003 = vmatprep.mubr.msk.f32.mxu1 %vm534_vm2, %v516_v1 }
  0xfa   : > { %v525_v4 = vpop.f32.mrf.mxu0  ;;  %1004 = vmatmul.mubr.msk.f32.gmra.mxu1 %vm534_vm2, %v521_v63 }
  0xfb   : > { %550 = vst.msk [vmem:[%s1140_s18 + $0x78] sm:$0xff] %vm534_vm2, %v531_v3  ;;  %v526_v5 = vadd.f32 %v873_v37, %v525_v4 }
  0xfd   : > { %549 = vst.msk [vmem:[%s1140_s18 + $0x70] sm:$0xff] %vm534_vm2, %v526_v5  ;;  %1006 = vmatprep.mubr.msk.f32.mxu1 %vm534_vm2, %v526_v5 }
  0xfe   : > { %1007 = vmatmul.mubr.msk.f32.gmra.mxu1 %vm534_vm2, %v531_v3 }
 0x1a2   : > { %v987_v7 = vpop.f32.mrf.mxu1 }
 0x1a3   : > { %v682_v8 = vadd.f32 %v987_v7, %v894_v6 }
 0x1a4   : > { %v676_v9 = vpop.f32.mrf.mxu1 }
 0x1a5   : > { %757 = vst.msk [vmem:[%s1197_s24 + $0x8] sm:$0xff] %vm755_vm0, %v682_v8  ;;  %v677_v10 = vadd.f32 %v894_v6, %v676_v9 }
 0x1a6   : > { %v990_v11 = vpop.f32.mrf.mxu1 }
 0x1a7   : > { %756 = vst.msk [vmem:[%s1197_s24] sm:$0xff] %vm755_vm0, %v677_v10  ;;  %v692_v12 = vadd.f32 %v990_v11, %v894_v6 }
 0x1a8   : > { %v686_v13 = vpop.f32.mrf.mxu1 }
 0x1a9   : > { %759 = vst.msk [vmem:[%s1197_s24 + $0x18] sm:$0xff] %vm755_vm0, %v692_v12  ;;  %v687_v14 = vadd.f32 %v894_v6, %v686_v13 }
 0x1aa   : > { %v993_v15 = vpop.f32.mrf.mxu1 }
 0x1ab   : > { %758 = vst.msk [vmem:[%s1197_s24 + $0x10] sm:$0xff] %vm755_vm0, %v687_v14  ;;  %v702_v16 = vadd.f32 %v993_v15, %v894_v6 }
 0x1ac   : > { %v696_v17 = vpop.f32.mrf.mxu1 }
 0x1ad   : > { %761 = vst.msk [vmem:[%s1197_s24 + $0x28] sm:$0xff] %vm755_vm0, %v702_v16  ;;  %v697_v18 = vadd.f32 %v894_v6, %v696_v17 }
 0x1ae   : > { %v996_v19 = vpop.f32.mrf.mxu1 }
 0x1af   : > { %760 = vst.msk [vmem:[%s1197_s24 + $0x20] sm:$0xff] %vm755_vm0, %v697_v18  ;;  %v712_v20 = vadd.f32 %v996_v19, %v894_v6 }
 0x1b0   : > { %v706_v21 = vpop.f32.mrf.mxu1 }
 0x1b1   : > { %763 = vst.msk [vmem:[%s1197_s24 + $0x38] sm:$0xff] %vm755_vm0, %v712_v20  ;;  %v707_v22 = vadd.f32 %v894_v6, %v706_v21 }
 0x1b2   : > { %v999_v23 = vpop.f32.mrf.mxu1 }
 0x1b3   : > { %762 = vst.msk [vmem:[%s1197_s24 + $0x30] sm:$0xff] %vm755_vm0, %v707_v22  ;;  %v722_v24 = vadd.f32 %v999_v23, %v894_v6 }
 0x1b4   : > { %v716_v25 = vpop.f32.mrf.mxu1 }
 0x1b5   : > { %765 = vst.msk [vmem:[%s1197_s24 + $0x48] sm:$0xff] %vm755_vm0, %v722_v24  ;;  %v717_v26 = vadd.f32 %v894_v6, %v716_v25 }
 0x1b6   : > { %v1002_v27 = vpop.f32.mrf.mxu1 }
 0x1b7   : > { %764 = vst.msk [vmem:[%s1197_s24 + $0x40] sm:$0xff] %vm755_vm0, %v717_v26  ;;  %v732_v28 = vadd.f32 %v1002_v27, %v894_v6 }
 0x1b8   : > { %v726_v29 = vpop.f32.mrf.mxu1 }
 0x1b9   : > { %767 = vst.msk [vmem:[%s1197_s24 + $0x58] sm:$0xff] %vm755_vm0, %v732_v28  ;;  %v727_v30 = vadd.f32 %v894_v6, %v726_v29 }
 0x1ba   : > { %v1005_v31 = vpop.f32.mrf.mxu1 }
 0x1bb   : > { %766 = vst.msk [vmem:[%s1197_s24 + $0x50] sm:$0xff] %vm755_vm0, %v727_v30  ;;  %v742_v32 = vadd.f32 %v1005_v31, %v894_v6 }
 0x1bc   : > { %v736_v33 = vpop.f32.mrf.mxu1 }
 0x1bd   : > { %769 = vst.msk [vmem:[%s1197_s24 + $0x68] sm:$0xff] %vm755_vm0, %v742_v32  ;;  %v737_v34 = vadd.f32 %v894_v6, %v736_v33 }
 0x1be   : > { %v1008_v35 = vpop.f32.mrf.mxu1 }
 0x1bf   : > { %768 = vst.msk [vmem:[%s1197_s24 + $0x60] sm:$0xff] %vm755_vm0, %v737_v34  ;;  %v752_v36 = vadd.f32 %v1008_v35, %v894_v6 }
 0x1c0   : > { %v746_v37 = vpop.f32.mrf.mxu1 }
 0x1c1   : > { %771 = vst.msk [vmem:[%s1197_s24 + $0x78] sm:$0xff] %vm755_vm0, %v752_v36  ;;  %v747_v38 = vadd.f32 %v894_v6, %v746_v37 }
 0x1c3   : > { %770 = vst.msk [vmem:[%s1197_s24 + $0x70] sm:$0xff] %vm755_vm0, %v747_v38 }
 0x1c4 PF: > { %s17_s21 = sadd.s32 1, %s1023_s21  }
 0x1c5   : > { %p14_p4 = scmp.ge.s32.totalorder %s17_s21, 6  }
 0x1c7   :  { %16 = sbr.rel (!%p14_p4) target bundleno = 1 (0x1), region = 82 }

</bundles_post_ra>
